<compile_context>
chip_gen: v5e
topology: v5e:2x2
jax: 0.10.0
libtpu: 0.0.40
codegen_flags: <defaults>
</compile_context>

<pallas_src>
import functools
import numpy as np
import jax
import jax.numpy as jnp
from jax.experimental import pallas as pl
from jax.experimental.pallas import tpu as pltpu

EPS = 1e-5
NEG_SLOPE = 0.2


def _round8(n):
    return -(-n // 8) * 8


def _leaky_relu(x):
    return jnp.where(x > 0, x, NEG_SLOPE * x)


# ---------------------------------------------------------------------------
# Kernel: x @ W1' + b1' -> LReLU -> @ W2' + b2' -> LReLU -> @ W3 + b3
# (BN already folded into W1'/b1', W2'/b2'.)  All parameters come from a single
# packed slab; segment offsets are static Python ints (free ref slices).
# ---------------------------------------------------------------------------
def _disc_kernel(x_ref, p_ref, o_ref, *,
                 in_dim, hid, out_dim,
                 off_b1, off_w2, off_b2, off_w3, off_b3):
    x = x_ref[...].astype(jnp.float32)

    w1 = p_ref[0:in_dim, :]                      # [in, hid]
    b1 = p_ref[off_b1:off_b1 + 1, :]             # [1, hid]
    w2 = p_ref[off_w2:off_w2 + hid, :]           # [hid, hid]
    b2 = p_ref[off_b2:off_b2 + 1, :]             # [1, hid]
    w3 = p_ref[off_w3:off_w3 + hid, :]           # [hid, hid] (cols >= out_dim are 0)
    b3 = p_ref[off_b3:off_b3 + 1, :]             # [1, hid]   (cols >= out_dim are 0)

    h = jnp.dot(x, w1, preferred_element_type=jnp.float32) + b1
    h = _leaky_relu(h)
    h = jnp.dot(h, w2, preferred_element_type=jnp.float32) + b2
    h = _leaky_relu(h)
    y = jnp.dot(h, w3, preferred_element_type=jnp.float32) + b3

    o_ref[...] = y[:, 0:out_dim].astype(o_ref.dtype)


# ---------------------------------------------------------------------------
# Parameter construction (matches PyTorch defaults at __init__ time) and the
# eval-mode BN folding + single-slab packing.
# ---------------------------------------------------------------------------
def make_params(key, in_dim, out_dim=1, dtype=jnp.float32):
    """nn.Linear: weight/bias ~ U(-1/sqrt(fan_in), 1/sqrt(fan_in));
    nn.BatchNorm1d: gamma=1, beta=0, running_mean=0, running_var=1.
    Linear weights are stored transposed ([in, out]) for x @ W."""
    hid = in_dim // 2
    ks = jax.random.split(key, 6)

    def linear(kw, kb, fan_in, fan_out):
        bound = 1.0 / np.sqrt(fan_in)
        w = jax.random.uniform(kw, (fan_in, fan_out), dtype, -bound, bound)
        b = jax.random.uniform(kb, (1, fan_out), dtype, -bound, bound)
        return w, b

    w1, b1 = linear(ks[0], ks[1], in_dim, hid)
    w2, b2 = linear(ks[2], ks[3], hid, hid)
    w3, b3 = linear(ks[4], ks[5], hid, out_dim)

    def bn(n):
        return (jnp.ones((1, n), dtype),    # gamma
                jnp.zeros((1, n), dtype),   # beta
                jnp.zeros((1, n), dtype),   # running_mean
                jnp.ones((1, n), dtype))    # running_var

    g1, be1, m1, v1 = bn(hid)
    g2, be2, m2, v2 = bn(hid)
    return dict(w1=w1, b1=b1, g1=g1, be1=be1, m1=m1, v1=v1,
                w2=w2, b2=b2, g2=g2, be2=be2, m2=m2, v2=v2,
                w3=w3, b3=b3)


def fold_and_pack_params(p):
    """Fold eval-mode BatchNorm into the Linears and pack everything into one
    f32 slab [rows, hid] with 8-row-aligned segments (static kernel offsets)."""
    scale1 = p["g1"] * jax.lax.rsqrt(p["v1"] + EPS)        # [1, hid]
    w1 = p["w1"] * scale1                                  # cols scaled
    b1 = (p["b1"] - p["m1"]) * scale1 + p["be1"]
    scale2 = p["g2"] * jax.lax.rsqrt(p["v2"] + EPS)
    w2 = p["w2"] * scale2
    b2 = (p["b2"] - p["m2"]) * scale2 + p["be2"]
    w3, b3 = p["w3"], p["b3"]

    in_dim, hid = w1.shape
    out_dim = w3.shape[1]
    assert out_dim <= hid, "slab packing assumes out_dim <= hid"

    off_w1 = 0
    off_b1 = _round8(in_dim)
    off_w2 = off_b1 + 8
    off_b2 = off_w2 + _round8(hid)
    off_w3 = off_b2 + 8
    off_b3 = off_w3 + _round8(hid)
    rows = off_b3 + 8

    slab = jnp.zeros((rows, hid), jnp.float32)
    slab = slab.at[off_w1:off_w1 + in_dim, :].set(w1.astype(jnp.float32))
    slab = slab.at[off_b1:off_b1 + 1, :].set(b1.astype(jnp.float32))
    slab = slab.at[off_w2:off_w2 + hid, :].set(w2.astype(jnp.float32))
    slab = slab.at[off_b2:off_b2 + 1, :].set(b2.astype(jnp.float32))
    slab = slab.at[off_w3:off_w3 + hid, :out_dim].set(w3.astype(jnp.float32))
    slab = slab.at[off_b3:off_b3 + 1, :out_dim].set(b3.astype(jnp.float32))

    offsets = dict(b1=off_b1, w2=off_w2, b2=off_b2, w3=off_w3, b3=off_b3)
    return slab, offsets, (in_dim, hid, out_dim)


# ---------------------------------------------------------------------------
# Wrapper
# ---------------------------------------------------------------------------
def discriminator_forward(x, slab, offsets, dims, *, tile_b=512):
    in_dim, hid, out_dim = dims
    B = x.shape[0]

    kernel = functools.partial(
        _disc_kernel,
        in_dim=in_dim, hid=hid, out_dim=out_dim,
        off_b1=offsets["b1"], off_w2=offsets["w2"], off_b2=offsets["b2"],
        off_w3=offsets["w3"], off_b3=offsets["b3"])

    # Pad batch to the f32 sublane multiple.
    b_pad = _round8(B)
    if b_pad != B:
        x = jnp.pad(x, ((0, b_pad - B), (0, 0)))

    if b_pad <= tile_b:
        # Small batch: no grid, everything resident in VMEM, body runs once.
        out = pl.pallas_call(
            kernel,
            out_shape=jax.ShapeDtypeStruct((b_pad, out_dim), x.dtype),
        )(x, slab)
    else:
        # Large batch: stream activations in batch tiles; weight slab has a
        # constant index_map so it stays VMEM-resident across grid steps.
        nb = pl.cdiv(b_pad, tile_b)
        b_full = nb * tile_b
        if b_full != b_pad:
            x = jnp.pad(x, ((0, b_full - b_pad), (0, 0)))
        out = pl.pallas_call(
            kernel,
            out_shape=jax.ShapeDtypeStruct((b_full, out_dim), x.dtype),
            grid=(nb,),
            in_specs=[pl.BlockSpec((tile_b, in_dim), lambda i: (i, 0)),
                      pl.BlockSpec(slab.shape, lambda i: (0, 0))],
            out_specs=pl.BlockSpec((tile_b, out_dim), lambda i: (i, 0)),
            compiler_params=pltpu.CompilerParams(
                dimension_semantics=("parallel",)),  # v7x: 2 TCs split the grid
        )(x, slab)

    return out[:B]


# ---------------------------------------------------------------------------
# Reference (un-folded params) for correctness
# ---------------------------------------------------------------------------
def reference_forward(x, p):
    h = x @ p["w1"] + p["b1"]
    h = (h - p["m1"]) * (p["g1"] / jnp.sqrt(p["v1"] + EPS)) + p["be1"]
    h = jnp.where(h > 0, h, NEG_SLOPE * h)
    h = h @ p["w2"] + p["b2"]
    h = (h - p["m2"]) * (p["g2"] / jnp.sqrt(p["v2"] + EPS)) + p["be2"]
    h = jnp.where(h > 0, h, NEG_SLOPE * h)
    return h @ p["w3"] + p["b3"]


if __name__ == "__main__":
    IN_DIM, OUT_DIM = 32, 1

    key = jax.random.PRNGKey(0)
    kx, kp, kx2 = jax.random.split(key, 3)
    params = make_params(kp, IN_DIM, OUT_DIM)
    slab, offsets, dims = fold_and_pack_params(params)

    # --- small-batch path (no grid) ---
    B = 8
    x = jax.random.normal(kx, (B, IN_DIM), jnp.float32)
    out = jax.block_until_ready(discriminator_forward(x, slab, offsets, dims))
    ref = reference_forward(x, params)
    assert out.shape == (B, OUT_DIM)
    np.testing.assert_allclose(np.asarray(out), np.asarray(ref),
                               rtol=1e-5, atol=1e-5)

    # --- batch-tiled path (grid over batch, weights resident) ---
    B2 = 600
    x2 = jax.random.normal(kx2, (B2, IN_DIM), jnp.float32)
    out2 = jax.block_until_ready(
        discriminator_forward(x2, slab, offsets, dims, tile_b=256))
    ref2 = reference_forward(x2, params)
    assert out2.shape == (B2, OUT_DIM)
    np.testing.assert_allclose(np.asarray(out2), np.asarray(ref2),
                               rtol=1e-5, atol=1e-5)

    print("KERNEL_OK")
</pallas_src>

<mosaic_0001>
module attributes {stable_mosaic.version = 11 : i64} {
  func.func @_disc_kernel(%arg0: memref<8x32xf32, #tpu.memory_space<vmem>>, %arg1: memref<88x16xf32, #tpu.memory_space<vmem>>, %arg2: memref<8x1xf32, #tpu.memory_space<vmem>>) attributes {dimension_semantics = [], scalar_prefetch = 0 : i64, scratch_operands = 0 : i64, tpu.core_type = #tpu.core_type<tc>} {
    %c0 = arith.constant 0 : index
    %c0_0 = arith.constant 0 : index
    %0 = vector.load %arg0[%c0, %c0_0] : memref<8x32xf32, #tpu.memory_space<vmem>>, vector<8x32xf32>
    %c0_1 = arith.constant 0 : index
    %c0_2 = arith.constant 0 : index
    %1 = vector.load %arg1[%c0_1, %c0_2] : memref<88x16xf32, #tpu.memory_space<vmem>>, vector<32x16xf32>
    %c32 = arith.constant 32 : index
    %c0_3 = arith.constant 0 : index
    %2 = vector.load %arg1[%c32, %c0_3] : memref<88x16xf32, #tpu.memory_space<vmem>>, vector<1x16xf32>
    %c40 = arith.constant 40 : index
    %c0_4 = arith.constant 0 : index
    %3 = vector.load %arg1[%c40, %c0_4] : memref<88x16xf32, #tpu.memory_space<vmem>>, vector<16x16xf32>
    %c56 = arith.constant 56 : index
    %c0_5 = arith.constant 0 : index
    %4 = vector.load %arg1[%c56, %c0_5] : memref<88x16xf32, #tpu.memory_space<vmem>>, vector<1x16xf32>
    %c64 = arith.constant 64 : index
    %c0_6 = arith.constant 0 : index
    %5 = vector.load %arg1[%c64, %c0_6] : memref<88x16xf32, #tpu.memory_space<vmem>>, vector<16x16xf32>
    %c80 = arith.constant 80 : index
    %c0_7 = arith.constant 0 : index
    %6 = vector.load %arg1[%c80, %c0_7] : memref<88x16xf32, #tpu.memory_space<vmem>>, vector<1x16xf32>
    %cst = arith.constant dense<0.000000e+00> : vector<8x16xf32>
    %7 = tpu.matmul %0, %1, %cst {dimension_numbers = #tpu.dot_dimension_numbers<[1], [0], [0], [1], [0, 0, 1, 1], [], []>} : vector<8x32xf32>, vector<32x16xf32>, vector<8x16xf32> -> vector<8x16xf32>
    %8 = vector.broadcast %2 : vector<1x16xf32> to vector<8x16xf32>
    %9 = arith.addf %7, %8 : vector<8x16xf32>
    %cst_8 = arith.constant 0.000000e+00 : f32
    %10 = vector.broadcast %cst_8 : f32 to vector<8x16xf32>
    %11 = arith.cmpf ogt, %9, %10 : vector<8x16xf32>
    %cst_9 = arith.constant 2.000000e-01 : f32
    %12 = vector.broadcast %cst_9 : f32 to vector<8x16xf32>
    %13 = arith.mulf %12, %9 : vector<8x16xf32>
    %14 = arith.select %11, %9, %13 : vector<8x16xi1>, vector<8x16xf32>
    %cst_10 = arith.constant dense<0.000000e+00> : vector<8x16xf32>
    %15 = tpu.matmul %14, %3, %cst_10 {dimension_numbers = #tpu.dot_dimension_numbers<[1], [0], [0], [1], [0, 0, 1, 1], [], []>} : vector<8x16xf32>, vector<16x16xf32>, vector<8x16xf32> -> vector<8x16xf32>
    %16 = vector.broadcast %4 : vector<1x16xf32> to vector<8x16xf32>
    %17 = arith.addf %15, %16 : vector<8x16xf32>
    %cst_11 = arith.constant 0.000000e+00 : f32
    %18 = vector.broadcast %cst_11 : f32 to vector<8x16xf32>
    %19 = arith.cmpf ogt, %17, %18 : vector<8x16xf32>
    %cst_12 = arith.constant 2.000000e-01 : f32
    %20 = vector.broadcast %cst_12 : f32 to vector<8x16xf32>
    %21 = arith.mulf %20, %17 : vector<8x16xf32>
    %22 = arith.select %19, %17, %21 : vector<8x16xi1>, vector<8x16xf32>
    %cst_13 = arith.constant dense<0.000000e+00> : vector<8x16xf32>
    %23 = tpu.matmul %22, %5, %cst_13 {dimension_numbers = #tpu.dot_dimension_numbers<[1], [0], [0], [1], [0, 0, 1, 1], [], []>} : vector<8x16xf32>, vector<16x16xf32>, vector<8x16xf32> -> vector<8x16xf32>
    %24 = vector.broadcast %6 : vector<1x16xf32> to vector<8x16xf32>
    %25 = arith.addf %23, %24 : vector<8x16xf32>
    %26 = vector.extract_strided_slice %25 {offsets = [0, 0], sizes = [8, 1], strides = [1, 1]} : vector<8x16xf32> to vector<8x1xf32>
    %c0_14 = arith.constant 0 : index
    %c0_15 = arith.constant 0 : index
    %27 = vector.load %arg2[%c0_14, %c0_15] : memref<8x1xf32, #tpu.memory_space<vmem>>, vector<8x1xf32>
    tpu.vector_store %arg2[%c0_14, %c0_15], %26 {strides = array<i32>} : memref<8x1xf32, #tpu.memory_space<vmem>>, vector<8x1xf32>,
    return
  }
}

</mosaic_0001>

<bundles_post_ra>
// kernel: tpu_custom_call.1
= control target key start
LH: loop header
LB: loop body
LE: loop exit
PB: predicated region body
PF: predicated region fallthrough
CT: control target
= control target key end

     0   :  { %vm24_vm0 = vcmask 261120   ;;  %vm52_vm2 = vcmask 130048   ;;  %vm103_vm4 = vcmask 7168   ;;  %s169_s1 = inlined_call_operand.vmem [shape: f32[88,16], index: 1, kind: input, shape index: {}]   ;;  %s170_s0 = inlined_call_operand.vmem [shape: f32[8,32], index: 0, kind: input, shape index: {}]   ;;  %s171_s2 = inlined_call_operand.vmem [shape: f32[8,1], index: 2, kind: output, shape index: {}]  }
   0x1   :  { %v15_v0 = vld [vmem:[%s169_s1 + $0x18] sm:$0xff]  ;;  %v14_v1 = vld [vmem:[%s169_s1 + $0x10] sm:$0xff]  ;;  %v13_v2 = vld [vmem:[%s169_s1 + $0x8] sm:$0xff] }
   0x2   :  { %40 = vmatpush.msra.mxu0 %v15_v0  ;;  %v12_v3 = vld [vmem:[%s169_s1] sm:$0xff]  ;;  %v18_v5 = vld [vmem:[%s169_s1 + $0x30] sm:$0xff]  ;;  %v17_v6 = vld [vmem:[%s169_s1 + $0x28] sm:$0xff] }
   0x3   :  { %v11_v4 = vld [vmem:[%s170_s0] sm:$0xff]  ;;  %70 = vmatpush.msra.mxu1 %v18_v5  ;;  %v21_v12 = vld [vmem:[%s169_s1 + $0x48] sm:$0xff]  ;;  %v113_v14 = vld [vmem:[%s169_s1 + $0x38] ss:$0 sm:$0xff] }
   0x4   :  { %41 = vmatpush.msra.mxu0 %v14_v1  ;;  %v112_v7 = vld [vmem:[%s169_s1 + $0x20] ss:$0 sm:$0xff]  ;;  %97 = vmatpush.msra.mxu2 %v21_v12  ;;  %v114_v19 = vld [vmem:[%s169_s1 + $0x50] ss:$0 sm:$0xff] }
   0x5   :  { %71 = vmatpush.msra.mxu1 %v17_v6  ;;  %v20_v13 = vld [vmem:[%s169_s1 + $0x40] sm:$0xff] }
   0x6   :  { %42 = vmatpush.msra.mxu0 %v13_v2  ;;  %98 = vmatpush.msra.mxu2 %v20_v13 }
   0x8   :  { %43 = vmatpush.msra.mxu0 %v12_v3 }
   0x9   :  { %109 = vmatmul.msk.f32.vlgmr.msra.gmra.mxu0 %vm24_vm0, %v11_v4 }
  0x86   :  { %v45_v8 = vpop.f32.mrf.mxu0 }
  0x87   :  { %v46_v9 = vadd.f32 %v112_v7, %v45_v8 }
  0x89   :  { %v49_v10 = vmul.f32 0.2, %v46_v9  ;;  %vm48_vm1 = vcmp.gt.f32.partialorder %v46_v9, 0.0 }
  0x8b   :  { %v50_v11 = vsel %vm48_vm1, %v46_v9, %v49_v10 }
  0x8c   :  { %110 = vmatmul.msk.f32.vlgmr.msra.gmra.mxu1 %vm52_vm2, %v50_v11 }
 0x109   :  { %v73_v15 = vpop.f32.mrf.mxu1 }
 0x10a   :  { %v74_v16 = vadd.f32 %v113_v14, %v73_v15 }
 0x10c   :  { %v77_v17 = vmul.f32 0.2, %v74_v16  ;;  %vm76_vm3 = vcmp.gt.f32.partialorder %v74_v16, 0.0 }
 0x10e   :  { %v78_v18 = vsel %vm76_vm3, %v74_v16, %v77_v17 }
 0x10f   :  { %111 = vmatmul.msk.f32.vlgmr.msra.gmra.mxu2 %vm52_vm2, %v78_v18 }
 0x192   :  { %v100_v20 = vpop.f32.mrf.mxu2 }
 0x193   :  { %v101_v21 = vadd.f32 %v114_v19, %v100_v20 }
 0x195   :  { %104 = vst.msk [vmem:[%s171_s2] sm:$0xff] %vm103_vm4, %v101_v21 }

</bundles_post_ra>
